<compile_context>
chip_gen: v7x
topology: tpu7x:2x2x1
jax: 0.10.0
libtpu: 0.0.40
codegen_flags: <defaults>
</compile_context>

<pallas_src>
import jax
import jax.numpy as jnp
from jax.experimental import pallas as pl
from jax.experimental.pallas import tpu as pltpu

EPS = 1e-5


# --------------------------------------------------------------------------- #
# Helpers
# --------------------------------------------------------------------------- #
def _round_up(n, m):
    return ((n + m - 1) // m) * m


def _vmem_limit_bytes():
    """Generation-aware VMEM cap (~70% of physical); safe fallback off-TPU."""
    try:
        cap = int(pltpu.get_tpu_info().vmem_capacity_bytes)
    except Exception:
        cap = 64 * 2 ** 20
    return int(min(cap * 7 // 10, 96 * 2 ** 20))


def _masked_tile_stats(h, tile_start, tile_m, M):
    """Per-tile (sum, centered sum of squares) over valid rows (< M).

    Masking uses jnp.where (a select), so garbage in the partial last tile —
    even NaN/Inf — cannot leak into the batch statistics.
    """
    rows = jax.lax.broadcasted_iota(jnp.int32, (tile_m, 1), 0) + tile_start
    valid = rows < M
    n = jnp.maximum(jnp.minimum(tile_m, M - tile_start), 1).astype(jnp.float32)
    hv = jnp.where(valid, h, 0.0)
    s = jnp.sum(hv, axis=0, keepdims=True)              # (1, H)
    mean = s * (1.0 / n)
    d = jnp.where(valid, h - mean, 0.0)
    m2 = jnp.sum(d * d, axis=0, keepdims=True)          # (1, H)
    return s, m2


def _store_rowstat(ref, v):
    # Stats outputs are (1, 8, H) blocks (8-sublane slab keeps the store
    # unmasked); row 0 carries the data, the wrapper reads [:, 0, :].
    ref[...] = jnp.broadcast_to(v, (8, v.shape[-1]))[None]


def _combine_bn_stats(s_slab, m2_slab, counts, M, gamma, beta):
    """Chan parallel-variance combine + fold BN into one scale/shift row."""
    s = s_slab[:, 0, :]                                  # (ntiles, H)
    m2 = m2_slab[:, 0, :]
    counts = counts.reshape(-1, 1)                       # (ntiles, 1)
    mean = jnp.sum(s, axis=0, keepdims=True) / M         # (1, H)
    mean_i = s / counts
    m2_tot = (jnp.sum(m2, axis=0, keepdims=True)
              + jnp.sum(counts * (mean_i - mean) ** 2, axis=0, keepdims=True))
    var = m2_tot / M                                     # biased (train mode)
    scale = gamma * jax.lax.rsqrt(var + EPS)             # (1, H)
    shift = beta - mean * scale
    return scale, shift


# --------------------------------------------------------------------------- #
# Kernels (closures capture only Python ints)
# --------------------------------------------------------------------------- #
def _make_stage1_kernel(M, tile_m):
    """h1 = x_tile @ W1 (bf16 MXU, f32 acc) + per-tile BN1 statistics."""
    def kernel(x_ref, w_ref, h_ref, s_ref, m2_ref):
        i = pl.program_id(0)
        h = jnp.dot(x_ref[...].astype(jnp.bfloat16), w_ref[...],
                    preferred_element_type=jnp.float32)
        h_ref[...] = h
        s, m2 = _masked_tile_stats(h, i * tile_m, tile_m, M)
        _store_rowstat(s_ref, s)
        _store_rowstat(m2_ref, m2)
    return kernel


def _make_stage2_kernel(M, tile_m):
    """BN1 apply (scale/shift) + ReLU + matmul W2 + per-tile BN2 statistics."""
    def kernel(h_ref, scale_ref, shift_ref, w_ref, o_ref, s_ref, m2_ref):
        i = pl.program_id(0)
        a = jnp.maximum(h_ref[...] * scale_ref[...] + shift_ref[...], 0.0)
        h2 = jnp.dot(a.astype(jnp.bfloat16), w_ref[...],
                     preferred_element_type=jnp.float32)
        o_ref[...] = h2
        s, m2 = _masked_tile_stats(h2, i * tile_m, tile_m, M)
        _store_rowstat(s_ref, s)
        _store_rowstat(m2_ref, m2)
    return kernel


def _make_stage3_kernel():
    """BN2 apply + ReLU + matmul W3 + bias + sigmoid, stored unpadded."""
    def kernel(h_ref, scale_ref, shift_ref, w_ref, b_ref, o_ref):
        a = jnp.maximum(h_ref[...] * scale_ref[...] + shift_ref[...], 0.0)
        z = jnp.dot(a.astype(jnp.bfloat16), w_ref[...],
                    preferred_element_type=jnp.float32) + b_ref[...]
        o_ref[...] = jax.nn.sigmoid(z).astype(o_ref.dtype)
    return kernel


# --------------------------------------------------------------------------- #
# Forward pass
# --------------------------------------------------------------------------- #
def fc2_forward(x, params, *, tile_m=None):
    """x: (B, T, F) float32. params: dict from prepare_params()."""
    B, T, F = x.shape
    H = params["w1"].shape[1]
    M = B * T

    if tile_m is None:
        tile_m = 256 if M >= 256 else _round_up(max(M, 8), 16)
    ntiles = -(-M // tile_m)
    counts = jnp.asarray([min(tile_m, M - i * tile_m) for i in range(ntiles)],
                         dtype=jnp.float32)

    x2d = x.reshape(M, F)           # raw f32; bf16 cast happens in-kernel
    cp = pltpu.CompilerParams(
        dimension_semantics=("parallel",),      # row tiles are independent
        vmem_limit_bytes=_vmem_limit_bytes(),
    )

    def row_spec(cols):
        return pl.BlockSpec((tile_m, cols), lambda i: (i, 0))

    def resident(r, c):             # same block every step -> stays in VMEM
        return pl.BlockSpec((r, c), lambda i: (0, 0))

    stat_spec = pl.BlockSpec((1, 8, H), lambda i: (i, 0, 0))
    stat_shape = jax.ShapeDtypeStruct((ntiles, 8, H), jnp.float32)

    # ---- stage 1: h1 = x @ W1 (b1 cancelled by BN) + per-tile BN1 stats ----
    h1, s1, m21 = pl.pallas_call(
        _make_stage1_kernel(M, tile_m),
        grid=(ntiles,),
        in_specs=[row_spec(F), resident(F, H)],
        out_specs=[row_spec(H), stat_spec, stat_spec],
        out_shape=[jax.ShapeDtypeStruct((M, H), jnp.float32),
                   stat_shape, stat_shape],
        compiler_params=cp,
        cost_estimate=pl.CostEstimate(
            flops=2 * M * F * H, transcendentals=0,
            bytes_accessed=4 * M * F + 2 * F * H + 4 * M * H + 64 * ntiles * H),
    )(x2d, params["w1"])
    scale1, shift1 = _combine_bn_stats(s1, m21, counts, M,
                                       params["g1"], params["be1"])

    # ---- stage 2: bn1+relu, h2 = a1 @ W2, per-tile BN2 stats ----
    h2, s2, m22 = pl.pallas_call(
        _make_stage2_kernel(M, tile_m),
        grid=(ntiles,),
        in_specs=[row_spec(H), resident(1, H), resident(1, H), resident(H, H)],
        out_specs=[row_spec(H), stat_spec, stat_spec],
        out_shape=[jax.ShapeDtypeStruct((M, H), jnp.float32),
                   stat_shape, stat_shape],
        compiler_params=cp,
        cost_estimate=pl.CostEstimate(
            flops=2 * M * H * H + 4 * M * H, transcendentals=0,
            bytes_accessed=8 * M * H + 2 * H * H + 64 * ntiles * H),
    )(h1, scale1, shift1, params["w2"])
    scale2, shift2 = _combine_bn_stats(s2, m22, counts, M,
                                       params["g2"], params["be2"])

    # ---- stage 3: bn2+relu, out = sigmoid(a2 @ W3 + b3), unpadded f32 ----
    out2d = pl.pallas_call(
        _make_stage3_kernel(),
        grid=(ntiles,),
        in_specs=[row_spec(H), resident(1, H), resident(1, H),
                  resident(H, F), resident(1, F)],
        out_specs=row_spec(F),
        out_shape=jax.ShapeDtypeStruct((M, F), jnp.float32),
        compiler_params=cp,
        cost_estimate=pl.CostEstimate(
            flops=2 * M * H * F + 4 * M * H, transcendentals=M * F,
            bytes_accessed=4 * M * H + 2 * H * F + 4 * M * F + 8 * H + 4 * F),
    )(h2, scale2, shift2, params["w3"], params["b3"])

    return out2d.reshape(B, T, F)


# --------------------------------------------------------------------------- #
# Parameters / reference
# --------------------------------------------------------------------------- #
def init_params(key, stft_features, hidden_size):
    """Xavier-normal weights, zero biases, BN gamma=1 / beta=0 (matches spec)."""
    k1, k2, k3 = jax.random.split(key, 3)

    def xavier(k, fan_in, fan_out):
        std = (2.0 / (fan_in + fan_out)) ** 0.5
        # Stored transposed (in, out) so the kernel computes x @ W directly.
        return std * jax.random.normal(k, (fan_in, fan_out), dtype=jnp.float32)

    F, H = stft_features, hidden_size
    ones_h = jnp.ones((1, H), jnp.float32)
    zeros_h = jnp.zeros((1, H), jnp.float32)
    return {
        "w1": xavier(k1, F, H), "b1": jnp.zeros((1, H), jnp.float32),
        "g1": ones_h, "be1": zeros_h,
        "w2": xavier(k2, H, H), "b2": jnp.zeros((1, H), jnp.float32),
        "g2": ones_h, "be2": zeros_h,
        "w3": xavier(k3, H, F), "b3": jnp.zeros((1, F), jnp.float32),
    }


def prepare_params(params):
    """One-time packing (outside the per-step forward): bf16 MXU weights;
    BN / output-bias rows stay f32.  b1/b2 are dropped: a Linear bias followed
    by train-mode BatchNorm is exactly cancelled by the mean subtraction."""
    return {
        "w1": params["w1"].astype(jnp.bfloat16),
        "w2": params["w2"].astype(jnp.bfloat16),
        "w3": params["w3"].astype(jnp.bfloat16),
        "g1": params["g1"], "be1": params["be1"],
        "g2": params["g2"], "be2": params["be2"],
        "b3": params["b3"],
    }


def fc2_reference(x, params):
    """Pure-JAX f32 reference (PyTorch train-mode semantics, biases included)."""
    B, T, F = x.shape
    h = x.reshape(B * T, F)

    def bn_relu(h, g, be):
        mu = jnp.mean(h, axis=0, keepdims=True)
        var = jnp.mean((h - mu) ** 2, axis=0, keepdims=True)
        return jnp.maximum((h - mu) / jnp.sqrt(var + EPS) * g + be, 0.0)

    h = bn_relu(h @ params["w1"] + params["b1"], params["g1"], params["be1"])
    h = bn_relu(h @ params["w2"] + params["b2"], params["g2"], params["be2"])
    h = jax.nn.sigmoid(h @ params["w3"] + params["b3"])
    return h.reshape(B, T, F)


# --------------------------------------------------------------------------- #
if __name__ == "__main__":
    B, T = 2, 8                 # batch, sequence length
    STFT_FEATURES = 32
    HIDDEN = 32

    key = jax.random.PRNGKey(0)
    kx, kp = jax.random.split(key)
    x = jax.random.normal(kx, (B, T, STFT_FEATURES), dtype=jnp.float32)
    params = init_params(kp, STFT_FEATURES, HIDDEN)
    kernel_params = prepare_params(params)   # one-time bf16 cast, outside forward

    out = jax.jit(fc2_forward)(x, kernel_params)
    out = jax.block_until_ready(out)

    ref = fc2_reference(x, params)
    assert out.shape == (B, T, STFT_FEATURES)
    # bf16 MXU operands with f32 accumulation (intentional deviation from the
    # f32 PyTorch model) -> loose-but-safe tolerance.
    assert jnp.allclose(out, ref, atol=2.5e-2, rtol=1e-3), "mismatch vs reference"

    print("KERNEL_OK")
</pallas_src>

<mosaic_0001>
module attributes {stable_mosaic.version = 11 : i64} {
  func.func @kernel(%arg0: i32, %arg1: memref<16x32xf32, #tpu.memory_space<vmem>>, %arg2: memref<32x32xbf16, #tpu.memory_space<vmem>>, %arg3: memref<16x32xf32, #tpu.memory_space<vmem>>, %arg4: memref<1x8x32xf32, #tpu.memory_space<vmem>>, %arg5: memref<1x8x32xf32, #tpu.memory_space<vmem>>) attributes {dimension_semantics = [#tpu.dimension_semantics<parallel>], iteration_bounds = array<i64: 1>, scalar_prefetch = 0 : i64, scratch_operands = 0 : i64, tpu.core_type = #tpu.core_type<tc>, window_params = [{transform_indices = @transform_0, window_bounds = array<i64: 16, 32>}, {pipeline_mode = #tpu.pipeline_mode<synchronous>, transform_indices = @transform_1, window_bounds = array<i64: 32, 32>}, {transform_indices = @transform_2, window_bounds = array<i64: 16, 32>}, {transform_indices = @transform_3, window_bounds = array<i64: 1, 8, 32>}, {transform_indices = @transform_4, window_bounds = array<i64: 1, 8, 32>}]} {
    %c0 = arith.constant 0 : index
    %c0_0 = arith.constant 0 : index
    %0 = vector.load %arg1[%c0, %c0_0] : memref<16x32xf32, #tpu.memory_space<vmem>>, vector<16x32xf32>
    %1 = arith.truncf %0 : vector<16x32xf32> to vector<16x32xbf16>
    %c0_1 = arith.constant 0 : index
    %c0_2 = arith.constant 0 : index
    %2 = vector.load %arg2[%c0_1, %c0_2] : memref<32x32xbf16, #tpu.memory_space<vmem>>, vector<32x32xbf16>
    %cst = arith.constant dense<0.000000e+00> : vector<16x32xf32>
    %3 = tpu.matmul %1, %2, %cst {dimension_numbers = #tpu.dot_dimension_numbers<[1], [0], [0], [1], [0, 0, 1, 1], [], []>} : vector<16x32xbf16>, vector<32x32xbf16>, vector<16x32xf32> -> vector<16x32xf32>
    %c0_3 = arith.constant 0 : index
    %c0_4 = arith.constant 0 : index
    %4 = vector.load %arg3[%c0_3, %c0_4] : memref<16x32xf32, #tpu.memory_space<vmem>>, vector<16x32xf32>
    tpu.vector_store %arg3[%c0_3, %c0_4], %3 {strides = array<i32>} : memref<16x32xf32, #tpu.memory_space<vmem>>, vector<16x32xf32>,
    %c16_i32 = arith.constant 16 : i32
    %5 = arith.muli %arg0, %c16_i32 : i32
    %6 = tpu.iota {dimensions = array<i32: 0>} : vector<16x1xi32>
    %7 = vector.broadcast %5 : i32 to vector<16x1xi32>
    %8 = arith.addi %6, %7 : vector<16x1xi32>
    %c16_i32_5 = arith.constant 16 : i32
    %9 = vector.broadcast %c16_i32_5 : i32 to vector<16x1xi32>
    %10 = arith.cmpi slt, %8, %9 : vector<16x1xi32>
    %c16_i32_6 = arith.constant 16 : i32
    %11 = arith.subi %c16_i32_6, %5 : i32
    %c16_i32_7 = arith.constant 16 : i32
    %12 = arith.minsi %c16_i32_7, %11 : i32
    %c1_i32 = arith.constant 1 : i32
    %13 = arith.maxsi %12, %c1_i32 : i32
    %14 = arith.sitofp %13 : i32 to f32
    %cst_8 = arith.constant 0.000000e+00 : f32
    %15 = vector.shape_cast %10 : vector<16x1xi1> to vector<16x1xi1>
    %16 = vector.broadcast %15 : vector<16x1xi1> to vector<16x32xi1>
    %17 = vector.broadcast %cst_8 : f32 to vector<16x32xf32>
    %18 = arith.select %16, %3, %17 : vector<16x32xi1>, vector<16x32xf32>
    %cst_9 = arith.constant dense<0.000000e+00> : vector<32xf32>
    %19 = vector.multi_reduction <add>, %18, %cst_9 [0] : vector<16x32xf32> to vector<32xf32>
    %20 = vector.shape_cast %19 : vector<32xf32> to vector<1x32xf32>
    %cst_10 = arith.constant 1.000000e+00 : f32
    %21 = arith.divf %cst_10, %14 : f32
    %22 = vector.broadcast %21 : f32 to vector<1x32xf32>
    %23 = arith.mulf %20, %22 : vector<1x32xf32>
    %24 = vector.broadcast %23 : vector<1x32xf32> to vector<16x32xf32>
    %25 = arith.subf %3, %24 : vector<16x32xf32>
    %cst_11 = arith.constant 0.000000e+00 : f32
    %26 = vector.shape_cast %10 : vector<16x1xi1> to vector<16x1xi1>
    %27 = vector.broadcast %26 : vector<16x1xi1> to vector<16x32xi1>
    %28 = vector.broadcast %cst_11 : f32 to vector<16x32xf32>
    %29 = arith.select %27, %25, %28 : vector<16x32xi1>, vector<16x32xf32>
    %30 = arith.mulf %29, %29 : vector<16x32xf32>
    %cst_12 = arith.constant dense<0.000000e+00> : vector<32xf32>
    %31 = vector.multi_reduction <add>, %30, %cst_12 [0] : vector<16x32xf32> to vector<32xf32>
    %32 = vector.shape_cast %31 : vector<32xf32> to vector<1x32xf32>
    %33 = vector.shape_cast %20 : vector<1x32xf32> to vector<1x32xf32>
    %34 = vector.broadcast %33 : vector<1x32xf32> to vector<8x32xf32>
    %35 = vector.shape_cast %34 : vector<8x32xf32> to vector<1x8x32xf32>
    %c0_13 = arith.constant 0 : index
    %c0_14 = arith.constant 0 : index
    %c0_15 = arith.constant 0 : index
    %36 = vector.load %arg4[%c0_13, %c0_14, %c0_15] : memref<1x8x32xf32, #tpu.memory_space<vmem>>, vector<1x8x32xf32>
    tpu.vector_store %arg4[%c0_13, %c0_14, %c0_15], %35 {strides = array<i32>} : memref<1x8x32xf32, #tpu.memory_space<vmem>>, vector<1x8x32xf32>,
    %37 = vector.shape_cast %32 : vector<1x32xf32> to vector<1x32xf32>
    %38 = vector.broadcast %37 : vector<1x32xf32> to vector<8x32xf32>
    %39 = vector.shape_cast %38 : vector<8x32xf32> to vector<1x8x32xf32>
    %c0_16 = arith.constant 0 : index
    %c0_17 = arith.constant 0 : index
    %c0_18 = arith.constant 0 : index
    %40 = vector.load %arg5[%c0_16, %c0_17, %c0_18] : memref<1x8x32xf32, #tpu.memory_space<vmem>>, vector<1x8x32xf32>
    tpu.vector_store %arg5[%c0_16, %c0_17, %c0_18], %39 {strides = array<i32>} : memref<1x8x32xf32, #tpu.memory_space<vmem>>, vector<1x8x32xf32>,
    return
  }
  func.func @transform_0(%arg0: i32) -> (i32, i32) {
    %c0_i32 = arith.constant 0 : i32
    %c0_i32_0 = arith.constant 0 : i32
    return %arg0, %c0_i32 : i32, i32
  }
  func.func @transform_1(%arg0: i32) -> (i32, i32) {
    %c0_i32 = arith.constant 0 : i32
    %c0_i32_0 = arith.constant 0 : i32
    %c0_i32_1 = arith.constant 0 : i32
    return %c0_i32, %c0_i32_0 : i32, i32
  }
  func.func @transform_2(%arg0: i32) -> (i32, i32) {
    %c0_i32 = arith.constant 0 : i32
    %c0_i32_0 = arith.constant 0 : i32
    return %arg0, %c0_i32 : i32, i32
  }
  func.func @transform_3(%arg0: i32) -> (i32, i32, i32) {
    %c0_i32 = arith.constant 0 : i32
    %c0_i32_0 = arith.constant 0 : i32
    %c0_i32_1 = arith.constant 0 : i32
    return %arg0, %c0_i32, %c0_i32_0 : i32, i32, i32
  }
  func.func @transform_4(%arg0: i32) -> (i32, i32, i32) {
    %c0_i32 = arith.constant 0 : i32
    %c0_i32_0 = arith.constant 0 : i32
    %c0_i32_1 = arith.constant 0 : i32
    return %arg0, %c0_i32, %c0_i32_0 : i32, i32, i32
  }
}

module attributes {stable_mosaic.version = 11 : i64} {
  func.func @kernel(%arg0: i32, %arg1: memref<16x32xf32, #tpu.memory_space<vmem>>, %arg2: memref<1x32xf32, #tpu.memory_space<vmem>>, %arg3: memref<1x32xf32, #tpu.memory_space<vmem>>, %arg4: memref<32x32xbf16, #tpu.memory_space<vmem>>, %arg5: memref<16x32xf32, #tpu.memory_space<vmem>>, %arg6: memref<1x8x32xf32, #tpu.memory_space<vmem>>, %arg7: memref<1x8x32xf32, #tpu.memory_space<vmem>>) attributes {dimension_semantics = [#tpu.dimension_semantics<parallel>], iteration_bounds = array<i64: 1>, scalar_prefetch = 0 : i64, scratch_operands = 0 : i64, tpu.core_type = #tpu.core_type<tc>, window_params = [{transform_indices = @transform_0, window_bounds = array<i64: 16, 32>}, {pipeline_mode = #tpu.pipeline_mode<synchronous>, transform_indices = @transform_1, window_bounds = array<i64: 1, 32>}, {pipeline_mode = #tpu.pipeline_mode<synchronous>, transform_indices = @transform_2, window_bounds = array<i64: 1, 32>}, {pipeline_mode = #tpu.pipeline_mode<synchronous>, transform_indices = @transform_3, window_bounds = array<i64: 32, 32>}, {transform_indices = @transform_4, window_bounds = array<i64: 16, 32>}, {transform_indices = @transform_5, window_bounds = array<i64: 1, 8, 32>}, {transform_indices = @transform_6, window_bounds = array<i64: 1, 8, 32>}]} {
    %c0 = arith.constant 0 : index
    %c0_0 = arith.constant 0 : index
    %0 = vector.load %arg1[%c0, %c0_0] : memref<16x32xf32, #tpu.memory_space<vmem>>, vector<16x32xf32>
    %c0_1 = arith.constant 0 : index
    %c0_2 = arith.constant 0 : index
    %1 = vector.load %arg2[%c0_1, %c0_2] : memref<1x32xf32, #tpu.memory_space<vmem>>, vector<1x32xf32>
    %2 = vector.broadcast %1 : vector<1x32xf32> to vector<16x32xf32>
    %3 = arith.mulf %0, %2 : vector<16x32xf32>
    %c0_3 = arith.constant 0 : index
    %c0_4 = arith.constant 0 : index
    %4 = vector.load %arg3[%c0_3, %c0_4] : memref<1x32xf32, #tpu.memory_space<vmem>>, vector<1x32xf32>
    %5 = vector.broadcast %4 : vector<1x32xf32> to vector<16x32xf32>
    %6 = arith.addf %3, %5 : vector<16x32xf32>
    %cst = arith.constant 0.000000e+00 : f32
    %7 = vector.broadcast %cst : f32 to vector<16x32xf32>
    %8 = arith.maximumf %6, %7 : vector<16x32xf32>
    %9 = arith.truncf %8 : vector<16x32xf32> to vector<16x32xbf16>
    %c0_5 = arith.constant 0 : index
    %c0_6 = arith.constant 0 : index
    %10 = vector.load %arg4[%c0_5, %c0_6] : memref<32x32xbf16, #tpu.memory_space<vmem>>, vector<32x32xbf16>
    %cst_7 = arith.constant dense<0.000000e+00> : vector<16x32xf32>
    %11 = tpu.matmul %9, %10, %cst_7 {dimension_numbers = #tpu.dot_dimension_numbers<[1], [0], [0], [1], [0, 0, 1, 1], [], []>} : vector<16x32xbf16>, vector<32x32xbf16>, vector<16x32xf32> -> vector<16x32xf32>
    %c0_8 = arith.constant 0 : index
    %c0_9 = arith.constant 0 : index
    %12 = vector.load %arg5[%c0_8, %c0_9] : memref<16x32xf32, #tpu.memory_space<vmem>>, vector<16x32xf32>
    tpu.vector_store %arg5[%c0_8, %c0_9], %11 {strides = array<i32>} : memref<16x32xf32, #tpu.memory_space<vmem>>, vector<16x32xf32>,
    %c16_i32 = arith.constant 16 : i32
    %13 = arith.muli %arg0, %c16_i32 : i32
    %14 = tpu.iota {dimensions = array<i32: 0>} : vector<16x1xi32>
    %15 = vector.broadcast %13 : i32 to vector<16x1xi32>
    %16 = arith.addi %14, %15 : vector<16x1xi32>
    %c16_i32_10 = arith.constant 16 : i32
    %17 = vector.broadcast %c16_i32_10 : i32 to vector<16x1xi32>
    %18 = arith.cmpi slt, %16, %17 : vector<16x1xi32>
    %c16_i32_11 = arith.constant 16 : i32
    %19 = arith.subi %c16_i32_11, %13 : i32
    %c16_i32_12 = arith.constant 16 : i32
    %20 = arith.minsi %c16_i32_12, %19 : i32
    %c1_i32 = arith.constant 1 : i32
    %21 = arith.maxsi %20, %c1_i32 : i32
    %22 = arith.sitofp %21 : i32 to f32
    %cst_13 = arith.constant 0.000000e+00 : f32
    %23 = vector.shape_cast %18 : vector<16x1xi1> to vector<16x1xi1>
    %24 = vector.broadcast %23 : vector<16x1xi1> to vector<16x32xi1>
    %25 = vector.broadcast %cst_13 : f32 to vector<16x32xf32>
    %26 = arith.select %24, %11, %25 : vector<16x32xi1>, vector<16x32xf32>
    %cst_14 = arith.constant dense<0.000000e+00> : vector<32xf32>
    %27 = vector.multi_reduction <add>, %26, %cst_14 [0] : vector<16x32xf32> to vector<32xf32>
    %28 = vector.shape_cast %27 : vector<32xf32> to vector<1x32xf32>
    %cst_15 = arith.constant 1.000000e+00 : f32
    %29 = arith.divf %cst_15, %22 : f32
    %30 = vector.broadcast %29 : f32 to vector<1x32xf32>
    %31 = arith.mulf %28, %30 : vector<1x32xf32>
    %32 = vector.broadcast %31 : vector<1x32xf32> to vector<16x32xf32>
    %33 = arith.subf %11, %32 : vector<16x32xf32>
    %cst_16 = arith.constant 0.000000e+00 : f32
    %34 = vector.shape_cast %18 : vector<16x1xi1> to vector<16x1xi1>
    %35 = vector.broadcast %34 : vector<16x1xi1> to vector<16x32xi1>
    %36 = vector.broadcast %cst_16 : f32 to vector<16x32xf32>
    %37 = arith.select %35, %33, %36 : vector<16x32xi1>, vector<16x32xf32>
    %38 = arith.mulf %37, %37 : vector<16x32xf32>
    %cst_17 = arith.constant dense<0.000000e+00> : vector<32xf32>
    %39 = vector.multi_reduction <add>, %38, %cst_17 [0] : vector<16x32xf32> to vector<32xf32>
    %40 = vector.shape_cast %39 : vector<32xf32> to vector<1x32xf32>
    %41 = vector.shape_cast %28 : vector<1x32xf32> to vector<1x32xf32>
    %42 = vector.broadcast %41 : vector<1x32xf32> to vector<8x32xf32>
    %43 = vector.shape_cast %42 : vector<8x32xf32> to vector<1x8x32xf32>
    %c0_18 = arith.constant 0 : index
    %c0_19 = arith.constant 0 : index
    %c0_20 = arith.constant 0 : index
    %44 = vector.load %arg6[%c0_18, %c0_19, %c0_20] : memref<1x8x32xf32, #tpu.memory_space<vmem>>, vector<1x8x32xf32>
    tpu.vector_store %arg6[%c0_18, %c0_19, %c0_20], %43 {strides = array<i32>} : memref<1x8x32xf32, #tpu.memory_space<vmem>>, vector<1x8x32xf32>,
    %45 = vector.shape_cast %40 : vector<1x32xf32> to vector<1x32xf32>
    %46 = vector.broadcast %45 : vector<1x32xf32> to vector<8x32xf32>
    %47 = vector.shape_cast %46 : vector<8x32xf32> to vector<1x8x32xf32>
    %c0_21 = arith.constant 0 : index
    %c0_22 = arith.constant 0 : index
    %c0_23 = arith.constant 0 : index
    %48 = vector.load %arg7[%c0_21, %c0_22, %c0_23] : memref<1x8x32xf32, #tpu.memory_space<vmem>>, vector<1x8x32xf32>
    tpu.vector_store %arg7[%c0_21, %c0_22, %c0_23], %47 {strides = array<i32>} : memref<1x8x32xf32, #tpu.memory_space<vmem>>, vector<1x8x32xf32>,
    return
  }
  func.func @transform_0(%arg0: i32) -> (i32, i32) {
    %c0_i32 = arith.constant 0 : i32
    %c0_i32_0 = arith.constant 0 : i32
    return %arg0, %c0_i32 : i32, i32
  }
  func.func @transform_1(%arg0: i32) -> (i32, i32) {
    %c0_i32 = arith.constant 0 : i32
    %c0_i32_0 = arith.constant 0 : i32
    %c0_i32_1 = arith.constant 0 : i32
    return %c0_i32, %c0_i32_0 : i32, i32
  }
  func.func @transform_2(%arg0: i32) -> (i32, i32) {
    %c0_i32 = arith.constant 0 : i32
    %c0_i32_0 = arith.constant 0 : i32
    %c0_i32_1 = arith.constant 0 : i32
    return %c0_i32, %c0_i32_0 : i32, i32
  }
  func.func @transform_3(%arg0: i32) -> (i32, i32) {
    %c0_i32 = arith.constant 0 : i32
    %c0_i32_0 = arith.constant 0 : i32
    %c0_i32_1 = arith.constant 0 : i32
    return %c0_i32, %c0_i32_0 : i32, i32
  }
  func.func @transform_4(%arg0: i32) -> (i32, i32) {
    %c0_i32 = arith.constant 0 : i32
    %c0_i32_0 = arith.constant 0 : i32
    return %arg0, %c0_i32 : i32, i32
  }
  func.func @transform_5(%arg0: i32) -> (i32, i32, i32) {
    %c0_i32 = arith.constant 0 : i32
    %c0_i32_0 = arith.constant 0 : i32
    %c0_i32_1 = arith.constant 0 : i32
    return %arg0, %c0_i32, %c0_i32_0 : i32, i32, i32
  }
  func.func @transform_6(%arg0: i32) -> (i32, i32, i32) {
    %c0_i32 = arith.constant 0 : i32
    %c0_i32_0 = arith.constant 0 : i32
    %c0_i32_1 = arith.constant 0 : i32
    return %arg0, %c0_i32, %c0_i32_0 : i32, i32, i32
  }
}

module attributes {stable_mosaic.version = 11 : i64} {
  func.func @kernel(%arg0: i32, %arg1: memref<16x32xf32, #tpu.memory_space<vmem>>, %arg2: memref<1x32xf32, #tpu.memory_space<vmem>>, %arg3: memref<1x32xf32, #tpu.memory_space<vmem>>, %arg4: memref<32x32xbf16, #tpu.memory_space<vmem>>, %arg5: memref<1x32xf32, #tpu.memory_space<vmem>>, %arg6: memref<16x32xf32, #tpu.memory_space<vmem>>) attributes {dimension_semantics = [#tpu.dimension_semantics<parallel>], iteration_bounds = array<i64: 1>, scalar_prefetch = 0 : i64, scratch_operands = 0 : i64, tpu.core_type = #tpu.core_type<tc>, window_params = [{transform_indices = @transform_0, window_bounds = array<i64: 16, 32>}, {pipeline_mode = #tpu.pipeline_mode<synchronous>, transform_indices = @transform_1, window_bounds = array<i64: 1, 32>}, {pipeline_mode = #tpu.pipeline_mode<synchronous>, transform_indices = @transform_2, window_bounds = array<i64: 1, 32>}, {pipeline_mode = #tpu.pipeline_mode<synchronous>, transform_indices = @transform_3, window_bounds = array<i64: 32, 32>}, {pipeline_mode = #tpu.pipeline_mode<synchronous>, transform_indices = @transform_4, window_bounds = array<i64: 1, 32>}, {transform_indices = @transform_5, window_bounds = array<i64: 16, 32>}]} {
    %c0 = arith.constant 0 : index
    %c0_0 = arith.constant 0 : index
    %0 = vector.load %arg1[%c0, %c0_0] : memref<16x32xf32, #tpu.memory_space<vmem>>, vector<16x32xf32>
    %c0_1 = arith.constant 0 : index
    %c0_2 = arith.constant 0 : index
    %1 = vector.load %arg2[%c0_1, %c0_2] : memref<1x32xf32, #tpu.memory_space<vmem>>, vector<1x32xf32>
    %2 = vector.broadcast %1 : vector<1x32xf32> to vector<16x32xf32>
    %3 = arith.mulf %0, %2 : vector<16x32xf32>
    %c0_3 = arith.constant 0 : index
    %c0_4 = arith.constant 0 : index
    %4 = vector.load %arg3[%c0_3, %c0_4] : memref<1x32xf32, #tpu.memory_space<vmem>>, vector<1x32xf32>
    %5 = vector.broadcast %4 : vector<1x32xf32> to vector<16x32xf32>
    %6 = arith.addf %3, %5 : vector<16x32xf32>
    %cst = arith.constant 0.000000e+00 : f32
    %7 = vector.broadcast %cst : f32 to vector<16x32xf32>
    %8 = arith.maximumf %6, %7 : vector<16x32xf32>
    %9 = arith.truncf %8 : vector<16x32xf32> to vector<16x32xbf16>
    %c0_5 = arith.constant 0 : index
    %c0_6 = arith.constant 0 : index
    %10 = vector.load %arg4[%c0_5, %c0_6] : memref<32x32xbf16, #tpu.memory_space<vmem>>, vector<32x32xbf16>
    %cst_7 = arith.constant dense<0.000000e+00> : vector<16x32xf32>
    %11 = tpu.matmul %9, %10, %cst_7 {dimension_numbers = #tpu.dot_dimension_numbers<[1], [0], [0], [1], [0, 0, 1, 1], [], []>} : vector<16x32xbf16>, vector<32x32xbf16>, vector<16x32xf32> -> vector<16x32xf32>
    %c0_8 = arith.constant 0 : index
    %c0_9 = arith.constant 0 : index
    %12 = vector.load %arg5[%c0_8, %c0_9] : memref<1x32xf32, #tpu.memory_space<vmem>>, vector<1x32xf32>
    %13 = vector.broadcast %12 : vector<1x32xf32> to vector<16x32xf32>
    %14 = arith.addf %11, %13 : vector<16x32xf32>
    %15 = arith.negf %14 : vector<16x32xf32>
    %16 = math.exp %15 : vector<16x32xf32>
    %cst_10 = arith.constant 1.000000e+00 : f32
    %17 = vector.broadcast %cst_10 : f32 to vector<16x32xf32>
    %18 = arith.addf %17, %16 : vector<16x32xf32>
    %19 = arith.divf %17, %18 : vector<16x32xf32>
    %c0_11 = arith.constant 0 : index
    %c0_12 = arith.constant 0 : index
    %20 = vector.load %arg6[%c0_11, %c0_12] : memref<16x32xf32, #tpu.memory_space<vmem>>, vector<16x32xf32>
    tpu.vector_store %arg6[%c0_11, %c0_12], %19 {strides = array<i32>} : memref<16x32xf32, #tpu.memory_space<vmem>>, vector<16x32xf32>,
    return
  }
  func.func @transform_0(%arg0: i32) -> (i32, i32) {
    %c0_i32 = arith.constant 0 : i32
    %c0_i32_0 = arith.constant 0 : i32
    return %arg0, %c0_i32 : i32, i32
  }
  func.func @transform_1(%arg0: i32) -> (i32, i32) {
    %c0_i32 = arith.constant 0 : i32
    %c0_i32_0 = arith.constant 0 : i32
    %c0_i32_1 = arith.constant 0 : i32
    return %c0_i32, %c0_i32_0 : i32, i32
  }
  func.func @transform_2(%arg0: i32) -> (i32, i32) {
    %c0_i32 = arith.constant 0 : i32
    %c0_i32_0 = arith.constant 0 : i32
    %c0_i32_1 = arith.constant 0 : i32
    return %c0_i32, %c0_i32_0 : i32, i32
  }
  func.func @transform_3(%arg0: i32) -> (i32, i32) {
    %c0_i32 = arith.constant 0 : i32
    %c0_i32_0 = arith.constant 0 : i32
    %c0_i32_1 = arith.constant 0 : i32
    return %c0_i32, %c0_i32_0 : i32, i32
  }
  func.func @transform_4(%arg0: i32) -> (i32, i32) {
    %c0_i32 = arith.constant 0 : i32
    %c0_i32_0 = arith.constant 0 : i32
    %c0_i32_1 = arith.constant 0 : i32
    return %c0_i32, %c0_i32_0 : i32, i32
  }
  func.func @transform_5(%arg0: i32) -> (i32, i32) {
    %c0_i32 = arith.constant 0 : i32
    %c0_i32_0 = arith.constant 0 : i32
    return %arg0, %c0_i32 : i32, i32
  }
}

</mosaic_0001>

<bundles_post_ra>
// kernel: fc2_forward.5
= control target key start
LH: loop header
LB: loop body
LE: loop exit
PB: predicated region body
PF: predicated region fallthrough
CT: control target
= control target key end

     0   :  { %v201_v1 = vmov 0.0   ;;  %vm202_vm0 = vmmov 0   ;;  %s272_s0 = inlined_call_operand.vmem [shape: f32[16,32], index: 0, kind: input, shape index: {}]   ;;  %s273_s1 = inlined_call_operand.vmem [shape: f32[1,32], index: 1, kind: input, shape index: {}]   ;;  %s274_s2 = inlined_call_operand.vmem [shape: f32[1,32], index: 2, kind: input, shape index: {}]   ;;  %s275_s3 = inlined_call_operand.vmem [shape: bf16[32,32], index: 3, kind: input, shape index: {}]   ;;  %s276_s4 = inlined_call_operand.vmem [shape: f32[1,32], index: 4, kind: input, shape index: {}]   ;;  %s277_s5 = inlined_call_operand.hbm [shape: f32[16,32], index: 5, kind: output, shape index: {}]  }
   0x1   :  { %v167_v0 = vld [vmem:[%s275_s3] sm:$0xff]   ;;  %154 = vmatprep.subr.bf16.mxu0 %v201_v1  ;;  %v168_v2 = vld [vmem:[%s275_s3 + $0x8] sm:$0xff]   ;;  %158 = vmatprep.mubr.msk.bf16.mxu0 %vm202_vm0, %v201_v1 }
   0x2   :  { %155 = vmatpush3.bf16.msra.mxu0 %v167_v0  ;;  %v22_v3 = vld [vmem:[%s272_s0] sm:$0xff]  ;;  %v23_v4 = vld [vmem:[%s272_s0 + $0x8] sm:$0xff] }
   0x3   :  { %v143_v5 = vld [vmem:[%s273_s1] ss:$0 sm:$0xff]  ;;  %156 = vmatprep.subr.bf16.mxu0 %v201_v1 }
   0x4   :  { %v31_v6 = vmul.f32 %v143_v5, %v22_v3  ;;  %v32_v7 = vmul.f32 %v143_v5, %v23_v4  ;;  %v144_v8 = vld [vmem:[%s274_s2] ss:$0 sm:$0xff] }
   0x5   :  { %10 = vsyncpa [#allocation3], 0  ;;  %vm68_vm1 = vcmask 261120   ;;  %v145_v14 = vld [vmem:[%s276_s4] ss:$0 sm:$0xff]  ;;  %s203_s1 = smov [#allocation2]  }
   0x6   :  { %v40_v9 = vadd.f32 %v144_v8, %v31_v6  ;;  %v41_v10 = vadd.f32 %v144_v8, %v32_v7  ;;  %157 = vmatpush3.bf16.msra.mxu0 %v168_v2  ;;  %s132_s2 = sshll.u32 %s203_s1, 4  ;;  %s133_s2 = int_to_ptr.vmem [resolvable:$true] %s132_s2 }
   0x7   :  { %s177_s4 = scalar_lea.vmem %s133_s2, 256  ;;  %p182_p1 = scmp.lt.s32.totalorder %s133_s2, %s133_s2 }
   0x8   :  { %v42_v11 = vmax.f32 %v40_v9, 0.0  ;;  %v43_v12 = vmax.f32 %v41_v10, 0.0  ;;  %p178_p0 = scmp.ne.s32.totalorder %s133_s2, %s177_s4  ;;  %p183_p2 = scmp.lt.s32.totalorder %s177_s4, %s177_s4 }
   0xa   :  { %v44_v13 = vpack.c.bf16 %v43_v12, %v42_v11  ;;  %p184_p3 = por %p183_p2, %p182_p1 }
   0xc   :  { %159 = vmatmul.mubr.msk.bf16.vlgmr.msra.gmra.mrb[0].mxu0 %vm68_vm1, %v44_v13  ;;  %p185_p4 = pnand %p184_p3, %p178_p0 }
  0xdf   :  { %v106_v15 = vpop.f32.mrb[0].mxu0 }
  0xe0   :  { %v107_v16 = vadd.f32 %v145_v14, %v106_v15  ;;  %v160_v17 = vpop.f32.mrb[1].mxu0 }
  0xe1   :  { %v109_v18 = vpop.f32.mrb[2].mxu0 }
  0xe2   :  { %v149_v19 = vmul.f32 -1.442695, %v107_v16  ;;  %v110_v20 = vadd.f32 %v145_v14, %v109_v18  ;;  %v161_v21 = vpop.f32.mrb[3].mxu0 }
  0xe4   :  { %169 = vpow2.f32 %v149_v19  ;;  %v150_v22 = vmul.f32 -1.442695, %v110_v20 }
  0xe6   :  { %171 = vpow2.f32 %v150_v22 }
  0xee   :  { %v170_v23 = vpop.eup %169 }
  0xef   :  { %v119_v24 = vadd.f32 1.0, %v170_v23 }
  0xf0   :  { %v172_v25 = vpop.eup %171 }
  0xf1   :  { %173 = vrcp.f32 %v119_v24  ;;  %v120_v26 = vadd.f32 1.0, %v172_v25 }
  0xf3   :  { %175 = vrcp.f32 %v120_v26 }
  0xfb   :  { %v174_v27 = vpop.eup %173 }
  0xfc   :  { %125 = vst.msk [vmem:[#allocation2] sm:$0xff] %vm68_vm1, %v174_v27 }
  0xfd   :  { %v176_v28 = vpop.eup %175 }
  0xfe   :  { %126 = vst.msk [vmem:[#allocation2 + $0x8] sm:$0xff] %vm68_vm1, %v176_v28 }
  0xff   :  { %188 = shalt.err (!%p185_p4)
}
 0x100   :  { %s189_s7 = scalar_lea.hbm %s277_s5, 256 }
 0x101   :  { %p190_p5 = scmp.ne.s32.totalorder %s277_s5, %s189_s7  ;;  %p193_p6 = scmp.lt.u32.totalorder %s189_s7, %s277_s5 }
 0x103   :  { %p195_p7 = pnand %p193_p6, %p190_p5 }
 0x105   :  { %198 = shalt.err (!%p195_p7)
}
 0x106   :  { %s204_s12 = smov 128   ;;  %s205_s13 = smov 8  }
 0x107   :  { %138 = dma.vmem_to_hbm [thread:$0]  %s133_s2, 256, %s277_s5, [#allocation3], %s204_s12, %s204_s12, %s205_s13  }
 0x108   :  { %199 = dma.done.wait [#allocation3], 256  }
 0x109   :  { %200 = vsyncadd [#allocation3], 4294967040 }
 0x10a   :  { %142 = vsyncpa [#allocation3], 1 }

// kernel: fc2_forward.3
= control target key start
LH: loop header
LB: loop body
LE: loop exit
PB: predicated region body
PF: predicated region fallthrough
CT: control target
= control target key end

     0   :  { %10 = vsyncpa [#allocation3], 0  ;;  %s205_s15 = smov [#allocation2]   ;;  %s274_s0 = inlined_call_operand.hbm [shape: f32[16,32], index: 0, kind: input, shape index: {}]   ;;  %s275_s1 = inlined_call_operand.vmem [shape: bf16[32,32], index: 1, kind: input, shape index: {}]   ;;  %s276_s2 = inlined_call_operand.vmem [shape: f32[16,32], index: 2, kind: output, shape index: {0}]   ;;  %s277_s3 = inlined_call_operand.vmem [shape: f32[1,8,32], index: 3, kind: output, shape index: {1}]   ;;  %s278_s4 = inlined_call_operand.vmem [shape: f32[1,8,32], index: 4, kind: output, shape index: {2}]  }
   0x1   :  { %s16_s16 = sshll.u32 %s205_s15, 4  ;;  %s181_s19 = scalar_lea.hbm %s274_s0, 256  ;;  %s17_s16 = int_to_ptr.vmem [resolvable:$true] %s16_s16 }
   0x2   :  { %p182_p0 = scmp.ne.s32.totalorder %s274_s0, %s181_s19  ;;  %p185_p1 = scmp.lt.u32.totalorder %s181_s19, %s274_s0 }
   0x4   :  { %p187_p2 = pnand %p185_p1, %p182_p0 }
   0x6   :  { %190 = shalt.err (!%p187_p2)
}
   0x7   :  { %s191_s24 = scalar_lea.vmem %s17_s16, 256  ;;  %p196_p4 = scmp.lt.s32.totalorder %s17_s16, %s17_s16 }
   0x8   :  { %p192_p3 = scmp.ne.s32.totalorder %s17_s16, %s191_s24  ;;  %p197_p5 = scmp.lt.s32.totalorder %s191_s24, %s191_s24 }
   0xa   :  { %p198_p6 = por %p197_p5, %p196_p4 }
   0xc   :  { %p199_p7 = pnand %p198_p6, %p192_p3 }
   0xe   :  { %202 = shalt.err (!%p199_p7)
}
   0xf   :  { %s206_s25 = smov 128   ;;  %s207_s26 = smov 8  }
  0x10   :  { %22 = dma.hbm_to_vmem [thread:$0]  %s274_s0, 256, %s17_s16, [#allocation3], %s206_s25, %s206_s25, %s207_s26  }
  0x11   :  { %203 = dma.done.wait [#allocation3], 256  }
  0x12   :  { %204 = vsyncadd [#allocation3], 4294967040  ;;  %v208_v0 = vmov 0.0   ;;  %vm209_vm0 = vmmov 0   ;;  %v179_v1 = vld [vmem:[%s275_s1] sm:$0xff]   ;;  %v180_v2 = vld [vmem:[%s275_s1 + $0x8] sm:$0xff]  }
  0x13   :  { %166 = vmatprep.subr.bf16.mxu0 %v208_v0  ;;  %170 = vmatprep.mubr.msk.bf16.mxu0 %vm209_vm0, %v208_v0  ;;  %v29_v3 = vld [vmem:[#allocation2] sm:$0xff]  ;;  %v30_v4 = vld [vmem:[#allocation2 + $0x8] sm:$0xff]  ;;  %vm48_vm1 = vcmask 261120  }
  0x14   :  { %167 = vmatpush3.bf16.msra.mxu0 %v179_v1  ;;  %v31_v5 = vpack.c.bf16 %v30_v4, %v29_v3 }
  0x15   :  { %168 = vmatprep.subr.bf16.mxu0 %v208_v0 }
  0x18   :  { %169 = vmatpush3.bf16.msra.mxu0 %v180_v2 }
  0x1b   :  { %171 = vmatmul.mubr.msk.bf16.vlgmr.msra.gmra.mrb[0].mxu0 %vm48_vm1, %v31_v5 }
  0xee   :  { %v86_v6 = vpop.f32.mrb[0].mxu0 }
  0xef   :  { %93 = vst.msk [vmem:[%s276_s2] sm:$0xff] %vm48_vm1, %v86_v6  ;;  %v172_v7 = vpop.f32.mrb[1].mxu0  ;;  %v116_v9 = vsel %vm48_vm1, %v86_v6, 0.0 }
  0xf0   :  { %v89_v8 = vpop.f32.mrb[2].mxu0 }
  0xf1   :  { %94 = vst.msk [vmem:[%s276_s2 + $0x8] sm:$0xff] %vm48_vm1, %v89_v8  ;;  %v117_v10 = vsel %vm48_vm1, %v89_v8, 0.0  ;;  %v173_v11 = vpop.f32.mrb[3].mxu0 }
  0xf2   :  { %v118_v12 = vadd.f32 %v117_v10, %v116_v9 }
  0xf4   :  { %v119_v13 = vrot.slane %v118_v12, 4 }
  0xf6   :  { %v120_v14 = vadd.f32 %v119_v13, %v118_v12 }
  0xf8   :  { %v121_v15 = vrot.slane %v120_v14, 2 }
  0xfa   :  { %v122_v16 = vadd.f32 %v121_v15, %v120_v14 }
  0xfc   :  { %v123_v17 = vrot.slane %v122_v16, 1 }
  0xfe   :  { %v124_v18 = vadd.f32 %v123_v17, %v122_v16 }
 0x100   :  { %v129_v19 = vmul.f32 0.0625, %v124_v18  ;;  %145 = vst.msk [vmem:[%s277_s3] sm:$0xff] %vm48_vm1, %v124_v18 }
 0x102   :  { %v130_v20 = vsub.f32 %v86_v6, %v129_v19  ;;  %v131_v21 = vsub.f32 %v89_v8, %v129_v19 }
 0x104   :  { %v134_v22 = vmul.f32 %v130_v20, %v130_v20  ;;  %v135_v23 = vmul.f32 %v131_v21, %v131_v21 }
 0x106   :  { %v136_v24 = vsel %vm48_vm1, %v134_v22, 0.0  ;;  %v137_v25 = vsel %vm48_vm1, %v135_v23, 0.0 }
 0x107   :  { %v138_v26 = vadd.f32 %v137_v25, %v136_v24 }
 0x109   :  { %v139_v27 = vrot.slane %v138_v26, 4 }
 0x10b   :  { %v140_v28 = vadd.f32 %v139_v27, %v138_v26 }
 0x10d   :  { %v141_v29 = vrot.slane %v140_v28, 2 }
 0x10f   :  { %v142_v30 = vadd.f32 %v141_v29, %v140_v28 }
 0x111   :  { %v143_v31 = vrot.slane %v142_v30, 1 }
 0x113   :  { %v144_v32 = vadd.f32 %v143_v31, %v142_v30 }
 0x115   :  { %146 = vst.msk [vmem:[%s278_s4] sm:$0xff] %vm48_vm1, %v144_v32 }
 0x116   :  { %159 = vsyncpa [#allocation3], 1 }

// kernel: fc2_forward.4
= control target key start
LH: loop header
LB: loop body
LE: loop exit
PB: predicated region body
PF: predicated region fallthrough
CT: control target
= control target key end

     0   :  { %v191_v0 = vmov 0.0   ;;  %vm192_vm0 = vmmov 0   ;;  %vm60_vm1 = vcmask 261120   ;;  %s267_s3 = inlined_call_operand.vmem [shape: bf16[32,32], index: 3, kind: input, shape index: {}]   ;;  %s268_s0 = inlined_call_operand.vmem [shape: f32[16,32], index: 0, kind: input, shape index: {}]   ;;  %s269_s1 = inlined_call_operand.vmem [shape: f32[1,32], index: 1, kind: input, shape index: {}]   ;;  %s270_s2 = inlined_call_operand.vmem [shape: f32[1,32], index: 2, kind: input, shape index: {}]   ;;  %s271_s4 = inlined_call_operand.vmem [shape: f32[16,32], index: 4, kind: output, shape index: {0}]   ;;  %s272_s5 = inlined_call_operand.vmem [shape: f32[1,8,32], index: 5, kind: output, shape index: {1}]   ;;  %s273_s6 = inlined_call_operand.vmem [shape: f32[1,8,32], index: 6, kind: output, shape index: {2}]  }
   0x1   :  { %179 = vmatprep.subr.bf16.mxu0 %v191_v0  ;;  %v189_v1 = vld [vmem:[%s267_s3] sm:$0xff]   ;;  %183 = vmatprep.mubr.msk.bf16.mxu0 %vm192_vm0, %v191_v0  ;;  %v190_v2 = vld [vmem:[%s267_s3 + $0x8] sm:$0xff]  }
   0x2   :  { %180 = vmatpush3.bf16.msra.mxu0 %v189_v1  ;;  %v21_v3 = vld [vmem:[%s268_s0] sm:$0xff]  ;;  %v22_v4 = vld [vmem:[%s268_s0 + $0x8] sm:$0xff] }
   0x3   :  { %v171_v5 = vld [vmem:[%s269_s1] ss:$0 sm:$0xff]  ;;  %181 = vmatprep.subr.bf16.mxu0 %v191_v0 }
   0x4   :  { %v30_v6 = vmul.f32 %v171_v5, %v21_v3  ;;  %v31_v7 = vmul.f32 %v171_v5, %v22_v4  ;;  %v172_v8 = vld [vmem:[%s270_s2] ss:$0 sm:$0xff] }
   0x6   :  { %v39_v9 = vadd.f32 %v172_v8, %v30_v6  ;;  %v40_v10 = vadd.f32 %v172_v8, %v31_v7  ;;  %182 = vmatpush3.bf16.msra.mxu0 %v190_v2 }
   0x8   :  { %v41_v11 = vmax.f32 %v39_v9, 0.0  ;;  %v42_v12 = vmax.f32 %v40_v10, 0.0 }
   0xa   :  { %v43_v13 = vpack.c.bf16 %v42_v12, %v41_v11 }
   0xc   :  { %184 = vmatmul.mubr.msk.bf16.vlgmr.msra.gmra.mrb[0].mxu0 %vm60_vm1, %v43_v13 }
  0xdf   :  { %v98_v14 = vpop.f32.mrb[0].mxu0 }
  0xe0   :  { %105 = vst.msk [vmem:[%s271_s4] sm:$0xff] %vm60_vm1, %v98_v14  ;;  %v185_v15 = vpop.f32.mrb[1].mxu0  ;;  %v128_v17 = vsel %vm60_vm1, %v98_v14, 0.0 }
  0xe1   :  { %v101_v16 = vpop.f32.mrb[2].mxu0 }
  0xe2   :  { %106 = vst.msk [vmem:[%s271_s4 + $0x8] sm:$0xff] %vm60_vm1, %v101_v16  ;;  %v129_v18 = vsel %vm60_vm1, %v101_v16, 0.0  ;;  %v186_v19 = vpop.f32.mrb[3].mxu0 }
  0xe3   :  { %v130_v20 = vadd.f32 %v129_v18, %v128_v17 }
  0xe5   :  { %v131_v21 = vrot.slane %v130_v20, 4 }
  0xe7   :  { %v132_v22 = vadd.f32 %v131_v21, %v130_v20 }
  0xe9   :  { %v133_v23 = vrot.slane %v132_v22, 2 }
  0xeb   :  { %v134_v24 = vadd.f32 %v133_v23, %v132_v22 }
  0xed   :  { %v135_v25 = vrot.slane %v134_v24, 1 }
  0xef   :  { %v136_v26 = vadd.f32 %v135_v25, %v134_v24 }
  0xf1   :  { %v141_v27 = vmul.f32 0.0625, %v136_v26  ;;  %157 = vst.msk [vmem:[%s272_s5] sm:$0xff] %vm60_vm1, %v136_v26 }
  0xf3   :  { %v142_v28 = vsub.f32 %v98_v14, %v141_v27  ;;  %v143_v29 = vsub.f32 %v101_v16, %v141_v27 }
  0xf5   :  { %v146_v30 = vmul.f32 %v142_v28, %v142_v28  ;;  %v147_v31 = vmul.f32 %v143_v29, %v143_v29 }
  0xf7   :  { %v148_v32 = vsel %vm60_vm1, %v146_v30, 0.0  ;;  %v149_v33 = vsel %vm60_vm1, %v147_v31, 0.0 }
  0xf8   :  { %v150_v34 = vadd.f32 %v149_v33, %v148_v32 }
  0xfa   :  { %v151_v35 = vrot.slane %v150_v34, 4 }
  0xfc   :  { %v152_v36 = vadd.f32 %v151_v35, %v150_v34 }
  0xfe   :  { %v153_v37 = vrot.slane %v152_v36, 2 }
 0x100   :  { %v154_v38 = vadd.f32 %v153_v37, %v152_v36 }
 0x102   :  { %v155_v39 = vrot.slane %v154_v38, 1 }
 0x104   :  { %v156_v40 = vadd.f32 %v155_v39, %v154_v38 }
 0x106   :  { %158 = vst.msk [vmem:[%s273_s6] sm:$0xff] %vm60_vm1, %v156_v40 }

</bundles_post_ra>
